<compile_context>
chip_gen: v7x
topology: tpu7x:2x2x1
jax: 0.10.0
libtpu: 0.0.40
codegen_flags: <defaults>
</compile_context>

<pallas_src>
import jax
import jax.numpy as jnp
from jax.experimental import pallas as pl
from jax.experimental.pallas import tpu as pltpu

_LANE = 128
_SUBLANE = 8
_VMEM_BUDGET = 40 * 1024 * 1024   # conservative: fits v7x (64 MiB physical)
_VMEM_LIMIT = 48 * 1024 * 1024    # raised scoped limit (v5e default is 16 MiB)
_TK_MAX = 2048
_TB_MAX_DEFAULT = 256


def _round_up(n, m):
    return ((n + m - 1) // m) * m


def _vmem_bytes(TB, TK, Hp, Fp, w_bytes, x_bytes, out_bytes, single_buffer_weights):
    """Estimate per-step VMEM footprint of the kernel for budgeting."""
    nbuf_const = 1 if single_buffer_weights else 2
    b = 0
    b += 2 * TB * TK * x_bytes                       # x tile (double buffered)
    b += 2 * TK * Hp * w_bytes                       # W1 K-tile (index varies -> 2 bufs)
    b += nbuf_const * (Hp * Hp + Hp * Fp) * w_bytes  # W2, W3 resident
    b += nbuf_const * (2 * Hp + Fp) * 4              # biases (f32, tiny)
    b += 2 * TB * Fp * out_bytes                     # output tile (double buffered)
    b += TB * Hp * 4                                 # f32 fc1 accumulator scratch
    return b


def _fc_kernel(x_ref, w1_ref, b1_ref, w2_ref, b2_ref, w3_ref, b3_ref,
               o_ref, acc_ref):
    # Grid = (batch tiles, fc1 K tiles).  acc_ref holds the f32 fc1 partials.
    k = pl.program_id(1)

    @pl.when(k == 0)
    def _init():
        acc_ref[...] = jnp.zeros_like(acc_ref)

    # fc1 partial product for this K tile (bf16 x bf16 -> f32 accumulate).
    acc_ref[...] += jnp.dot(x_ref[...], w1_ref[...],
                            preferred_element_type=jnp.float32)

    @pl.when(k == pl.num_programs(1) - 1)
    def _finalize():
        h = jnp.maximum(acc_ref[...] + b1_ref[...], 0.0)
        # TODO(synk): dropout(p=0.5) treated as identity (eval/inference mode).
        h = h.astype(w2_ref.dtype)                       # bf16 for the MXU
        h = jnp.dot(h, w2_ref[...], preferred_element_type=jnp.float32)
        h = jnp.maximum(h + b2_ref[...], 0.0).astype(w3_ref.dtype)
        out = jnp.dot(h, w3_ref[...], preferred_element_type=jnp.float32)
        o_ref[...] = (out + b3_ref[...]).astype(o_ref.dtype)


def prepare_vgg_fc_params(w1, b1, w2, b2, w3, b3, *,
                          param_dtype=jnp.bfloat16,
                          batch_tile=_TB_MAX_DEFAULT):
    """One-time weight prep (transpose + lane padding + bf16 cast), hoisted out
    of the per-call forward.  torch nn.Linear layout: w*: (out, in), b*: (out,)."""
    H, D = w1.shape
    F = w3.shape[0]
    assert w2.shape == (H, H) and w3.shape == (F, H)

    Hp = _round_up(H, _LANE)
    Fp = _round_up(F, _LANE)
    Dp0 = _round_up(D, _LANE)

    w_bytes = jnp.dtype(param_dtype).itemsize
    out_bytes = 4

    # Pick the fc1 K tile so per-step VMEM stays inside budget at the largest
    # batch tile we might use; then pad D up to a multiple of that tile.
    TK = min(Dp0, _TK_MAX)
    while TK > _LANE and _vmem_bytes(batch_tile, TK, Hp, Fp, w_bytes, w_bytes,
                                     out_bytes, True) > _VMEM_BUDGET:
        TK = max(_LANE, _round_up(TK // 2, _LANE))
    Dp = _round_up(Dp0, TK)

    # Resident-weight assumption for fc2/fc3 must hold even with minimal tiles.
    # TODO(synk): tile the Hp/Fp output dims of fc2/fc3 if this ever triggers.
    assert _vmem_bytes(_SUBLANE, _LANE, Hp, Fp, w_bytes, w_bytes, out_bytes,
                       True) <= _VMEM_BUDGET, (
        "fc2/fc3 weights too large to keep VMEM-resident; Hp/Fp tiling needed")

    f32 = jnp.float32
    w1p = jnp.zeros((Dp, Hp), param_dtype).at[:D, :H].set(w1.T.astype(param_dtype))
    b1p = jnp.zeros((1, Hp), f32).at[0, :H].set(b1.astype(f32))
    w2p = jnp.zeros((Hp, Hp), param_dtype).at[:H, :H].set(w2.T.astype(param_dtype))
    b2p = jnp.zeros((1, Hp), f32).at[0, :H].set(b2.astype(f32))
    w3p = jnp.zeros((Hp, Fp), param_dtype).at[:H, :F].set(w3.T.astype(param_dtype))
    b3p = jnp.zeros((1, Fp), f32).at[0, :F].set(b3.astype(f32))

    return dict(w1p=w1p, b1p=b1p, w2p=w2p, b2p=b2p, w3p=w3p, b3p=b3p,
                D=D, H=H, F=F, Dp=Dp, Hp=Hp, Fp=Fp, TK=TK,
                param_dtype=param_dtype, batch_tile=batch_tile)


def _build_call(Np, TB, Dp, TK, Hp, Fp, out_dtype, w_itemsize, x_itemsize,
                single_buffer_weights):
    nb = Np // TB
    nk = Dp // TK
    const_kw = (dict(pipeline_mode=pl.Buffered(1))
                if single_buffer_weights else {})

    cost = pl.CostEstimate(
        flops=2 * Np * (Dp * Hp + Hp * Hp + Hp * Fp),
        transcendentals=0,
        bytes_accessed=(Np * Dp * x_itemsize
                        + (Dp * Hp + Hp * Hp + Hp * Fp) * w_itemsize
                        + (2 * Hp + Fp) * 4
                        + Np * Fp * jnp.dtype(out_dtype).itemsize))

    return pl.pallas_call(
        _fc_kernel,
        out_shape=jax.ShapeDtypeStruct((Np, Fp), out_dtype),
        grid_spec=pltpu.PrefetchScalarGridSpec(
            num_scalar_prefetch=0,
            grid=(nb, nk),
            in_specs=[
                pl.BlockSpec((TB, TK), lambda i, k: (i, k)),              # x tile
                pl.BlockSpec((TK, Hp), lambda i, k: (k, 0)),              # W1^T K-tile
                pl.BlockSpec((1, Hp), lambda i, k: (0, 0), **const_kw),   # b1
                pl.BlockSpec((Hp, Hp), lambda i, k: (0, 0), **const_kw),  # W2^T
                pl.BlockSpec((1, Hp), lambda i, k: (0, 0), **const_kw),   # b2
                pl.BlockSpec((Hp, Fp), lambda i, k: (0, 0), **const_kw),  # W3^T
                pl.BlockSpec((1, Fp), lambda i, k: (0, 0), **const_kw),   # b3
            ],
            out_specs=pl.BlockSpec((TB, Fp), lambda i, k: (i, 0)),
            scratch_shapes=[pltpu.VMEM((TB, Hp), jnp.float32)],
        ),
        compiler_params=pltpu.CompilerParams(
            dimension_semantics=("parallel", "arbitrary"),
            vmem_limit_bytes=_VMEM_LIMIT),
        cost_estimate=cost,
    )


def vgg_fc_forward(x, params):
    """x: (N, in_size*8*8).  params: output of prepare_vgg_fc_params."""
    N, D = x.shape
    assert D == params["D"], (D, params["D"])
    Dp, Hp, Fp, TK, F = (params["Dp"], params["Hp"], params["Fp"],
                         params["TK"], params["F"])
    p_dtype = params["param_dtype"]
    w_itemsize = jnp.dtype(p_dtype).itemsize
    out_dtype = jnp.float32

    # Batch tile: >=2 tiles when the batch is big enough so a 2-TC chip (v7x)
    # can shard the "parallel" axis; shrink further if over the VMEM budget.
    Np = _round_up(N, _SUBLANE)
    if Np >= 2 * _SUBLANE:
        TB = min(params["batch_tile"], _round_up((Np + 1) // 2, _SUBLANE))
    else:
        TB = Np
    while TB > _SUBLANE and _vmem_bytes(TB, TK, Hp, Fp, w_itemsize, w_itemsize,
                                        4, True) > _VMEM_BUDGET:
        TB = max(_SUBLANE, _round_up(TB // 2, _SUBLANE))
    Np = _round_up(Np, TB)

    # Per-call input prep only: lane/sublane-dense zero pad + bf16 cast.
    xp = jnp.zeros((Np, Dp), p_dtype).at[:N, :D].set(x.astype(p_dtype))

    args = (xp, params["w1p"], params["b1p"], params["w2p"], params["b2p"],
            params["w3p"], params["b3p"])
    try:
        out_padded = _build_call(Np, TB, Dp, TK, Hp, Fp, out_dtype,
                                 w_itemsize, w_itemsize, True)(*args)
    except Exception:
        # Fallback without pl.Buffered(1) in case this JAX build rejects
        # single-buffered BlockSpecs; correctness is identical.
        out_padded = _build_call(Np, TB, Dp, TK, Hp, Fp, out_dtype,
                                 w_itemsize, w_itemsize, False)(*args)

    return out_padded[:N, :F]


def reference_forward(x, w1, b1, w2, b2, w3, b3):
    h = jnp.maximum(x @ w1.T + b1, 0.0)   # fc1 + ReLU (+ eval-mode dropout)
    h = jnp.maximum(h @ w2.T + b2, 0.0)   # fc2 + ReLU (+ eval-mode dropout)
    return h @ w3.T + b3                  # fc3


if __name__ == "__main__":
    # Small shapes consistent with the module: in_size=4 -> 4*8*8=256 features,
    # out_size (hidden) = 32, final_size = 10, batch = 2.
    N, in_size, out_size, final_size = 2, 4, 32, 10
    D = in_size * 8 * 8

    key = jax.random.PRNGKey(0)
    kx, kw1, kb1, kw2, kb2, kw3, kb3 = jax.random.split(key, 7)

    x = jax.random.normal(kx, (N, D), dtype=jnp.float32)
    # Deterministic synthetic parameters in torch nn.Linear layout.
    w1 = 0.1 * jax.random.normal(kw1, (out_size, D), dtype=jnp.float32)
    b1 = 0.1 * jax.random.normal(kb1, (out_size,), dtype=jnp.float32)
    w2 = 0.1 * jax.random.normal(kw2, (out_size, out_size), dtype=jnp.float32)
    b2 = 0.1 * jax.random.normal(kb2, (out_size,), dtype=jnp.float32)
    w3 = 0.1 * jax.random.normal(kw3, (final_size, out_size), dtype=jnp.float32)
    b3 = 0.1 * jax.random.normal(kb3, (final_size,), dtype=jnp.float32)

    # One-time parameter prep (hoisted out of the per-call path).
    params = prepare_vgg_fc_params(w1, b1, w2, b2, w3, b3)

    out = vgg_fc_forward(x, params)
    out = jax.block_until_ready(out)

    ref = jax.block_until_ready(reference_forward(x, w1, b1, w2, b2, w3, b3))
    assert out.shape == (N, final_size), out.shape
    # bf16 weights/activations with f32 accumulation -> small drift vs f32 ref.
    assert jnp.allclose(out, ref, rtol=5e-2, atol=5e-2), \
        float(jnp.max(jnp.abs(out - ref)))

    print("KERNEL_OK")
</pallas_src>

<mosaic_0001>
module attributes {stable_mosaic.version = 11 : i64} {
  func.func @_fc_kernel(%arg0: i32, %arg1: i32, %arg2: memref<8x256xbf16, #tpu.memory_space<vmem>>, %arg3: memref<256x128xbf16, #tpu.memory_space<vmem>>, %arg4: memref<1x128xf32, #tpu.memory_space<vmem>>, %arg5: memref<128x128xbf16, #tpu.memory_space<vmem>>, %arg6: memref<1x128xf32, #tpu.memory_space<vmem>>, %arg7: memref<128x128xbf16, #tpu.memory_space<vmem>>, %arg8: memref<1x128xf32, #tpu.memory_space<vmem>>, %arg9: memref<8x128xf32, #tpu.memory_space<vmem>>, %arg10: memref<8x128xf32, #tpu.memory_space<vmem>>) attributes {dimension_semantics = [#tpu.dimension_semantics<parallel>, #tpu.dimension_semantics<arbitrary>], iteration_bounds = array<i64: 1, 1>, scalar_prefetch = 0 : i64, scratch_operands = 1 : i64, tpu.core_type = #tpu.core_type<tc>, window_params = [{transform_indices = @transform_0, window_bounds = array<i64: 8, 256>}, {transform_indices = @transform_1, window_bounds = array<i64: 256, 128>}, {pipeline_mode = #tpu.pipeline_mode<synchronous>, transform_indices = @transform_2, window_bounds = array<i64: 1, 128>}, {pipeline_mode = #tpu.pipeline_mode<synchronous>, transform_indices = @transform_3, window_bounds = array<i64: 128, 128>}, {pipeline_mode = #tpu.pipeline_mode<synchronous>, transform_indices = @transform_4, window_bounds = array<i64: 1, 128>}, {pipeline_mode = #tpu.pipeline_mode<synchronous>, transform_indices = @transform_5, window_bounds = array<i64: 128, 128>}, {pipeline_mode = #tpu.pipeline_mode<synchronous>, transform_indices = @transform_6, window_bounds = array<i64: 1, 128>}, {transform_indices = @transform_7, window_bounds = array<i64: 8, 128>}]} {
    %c0_i32 = arith.constant 0 : i32
    %0 = arith.cmpi eq, %arg1, %c0_i32 : i32
    %1 = arith.extui %0 : i1 to i32
    %c0_i32_0 = arith.constant 0 : i32
    %2 = arith.cmpi ne, %1, %c0_i32_0 : i32
    scf.if %2 {
      %cst_10 = arith.constant 0.000000e+00 : f32
      %12 = vector.broadcast %cst_10 : f32 to vector<8x128xf32>
      %c0_11 = arith.constant 0 : index
      %c0_12 = arith.constant 0 : index
      %13 = vector.load %arg10[%c0_11, %c0_12] : memref<8x128xf32, #tpu.memory_space<vmem>>, vector<8x128xf32>
      tpu.vector_store %arg10[%c0_11, %c0_12], %12 {strides = array<i32>} : memref<8x128xf32, #tpu.memory_space<vmem>>, vector<8x128xf32>,
    } else {
    }
    %c0 = arith.constant 0 : index
    %c0_1 = arith.constant 0 : index
    %3 = vector.load %arg10[%c0, %c0_1] : memref<8x128xf32, #tpu.memory_space<vmem>>, vector<8x128xf32>
    %c0_2 = arith.constant 0 : index
    %c0_3 = arith.constant 0 : index
    %4 = vector.load %arg2[%c0_2, %c0_3] : memref<8x256xbf16, #tpu.memory_space<vmem>>, vector<8x256xbf16>
    %c0_4 = arith.constant 0 : index
    %c0_5 = arith.constant 0 : index
    %5 = vector.load %arg3[%c0_4, %c0_5] : memref<256x128xbf16, #tpu.memory_space<vmem>>, vector<256x128xbf16>
    %cst = arith.constant dense<0.000000e+00> : vector<8x128xf32>
    %6 = tpu.matmul %4, %5, %cst {dimension_numbers = #tpu.dot_dimension_numbers<[1], [0], [0], [1], [0, 0, 1, 1], [], []>} : vector<8x256xbf16>, vector<256x128xbf16>, vector<8x128xf32> -> vector<8x128xf32>
    %7 = arith.addf %3, %6 : vector<8x128xf32>
    %c0_6 = arith.constant 0 : index
    %c0_7 = arith.constant 0 : index
    %8 = vector.load %arg10[%c0_6, %c0_7] : memref<8x128xf32, #tpu.memory_space<vmem>>, vector<8x128xf32>
    tpu.vector_store %arg10[%c0_6, %c0_7], %7 {strides = array<i32>} : memref<8x128xf32, #tpu.memory_space<vmem>>, vector<8x128xf32>,
    %c0_i32_8 = arith.constant 0 : i32
    %9 = arith.cmpi eq, %arg1, %c0_i32_8 : i32
    %10 = arith.extui %9 : i1 to i32
    %c0_i32_9 = arith.constant 0 : i32
    %11 = arith.cmpi ne, %10, %c0_i32_9 : i32
    scf.if %11 {
      %c0_10 = arith.constant 0 : index
      %c0_11 = arith.constant 0 : index
      %12 = vector.load %arg10[%c0_10, %c0_11] : memref<8x128xf32, #tpu.memory_space<vmem>>, vector<8x128xf32>
      %c0_12 = arith.constant 0 : index
      %c0_13 = arith.constant 0 : index
      %13 = vector.load %arg4[%c0_12, %c0_13] : memref<1x128xf32, #tpu.memory_space<vmem>>, vector<1x128xf32>
      %14 = vector.broadcast %13 : vector<1x128xf32> to vector<8x128xf32>
      %15 = arith.addf %12, %14 : vector<8x128xf32>
      %cst_14 = arith.constant 0.000000e+00 : f32
      %16 = vector.broadcast %cst_14 : f32 to vector<8x128xf32>
      %17 = arith.maximumf %15, %16 : vector<8x128xf32>
      %18 = arith.truncf %17 : vector<8x128xf32> to vector<8x128xbf16>
      %c0_15 = arith.constant 0 : index
      %c0_16 = arith.constant 0 : index
      %19 = vector.load %arg5[%c0_15, %c0_16] : memref<128x128xbf16, #tpu.memory_space<vmem>>, vector<128x128xbf16>
      %cst_17 = arith.constant dense<0.000000e+00> : vector<8x128xf32>
      %20 = tpu.matmul %18, %19, %cst_17 {dimension_numbers = #tpu.dot_dimension_numbers<[1], [0], [0], [1], [0, 0, 1, 1], [], []>} : vector<8x128xbf16>, vector<128x128xbf16>, vector<8x128xf32> -> vector<8x128xf32>
      %c0_18 = arith.constant 0 : index
      %c0_19 = arith.constant 0 : index
      %21 = vector.load %arg6[%c0_18, %c0_19] : memref<1x128xf32, #tpu.memory_space<vmem>>, vector<1x128xf32>
      %22 = vector.broadcast %21 : vector<1x128xf32> to vector<8x128xf32>
      %23 = arith.addf %20, %22 : vector<8x128xf32>
      %cst_20 = arith.constant 0.000000e+00 : f32
      %24 = vector.broadcast %cst_20 : f32 to vector<8x128xf32>
      %25 = arith.maximumf %23, %24 : vector<8x128xf32>
      %26 = arith.truncf %25 : vector<8x128xf32> to vector<8x128xbf16>
      %c0_21 = arith.constant 0 : index
      %c0_22 = arith.constant 0 : index
      %27 = vector.load %arg7[%c0_21, %c0_22] : memref<128x128xbf16, #tpu.memory_space<vmem>>, vector<128x128xbf16>
      %cst_23 = arith.constant dense<0.000000e+00> : vector<8x128xf32>
      %28 = tpu.matmul %26, %27, %cst_23 {dimension_numbers = #tpu.dot_dimension_numbers<[1], [0], [0], [1], [0, 0, 1, 1], [], []>} : vector<8x128xbf16>, vector<128x128xbf16>, vector<8x128xf32> -> vector<8x128xf32>
      %c0_24 = arith.constant 0 : index
      %c0_25 = arith.constant 0 : index
      %29 = vector.load %arg8[%c0_24, %c0_25] : memref<1x128xf32, #tpu.memory_space<vmem>>, vector<1x128xf32>
      %30 = vector.broadcast %29 : vector<1x128xf32> to vector<8x128xf32>
      %31 = arith.addf %28, %30 : vector<8x128xf32>
      %c0_26 = arith.constant 0 : index
      %c0_27 = arith.constant 0 : index
      %32 = vector.load %arg9[%c0_26, %c0_27] : memref<8x128xf32, #tpu.memory_space<vmem>>, vector<8x128xf32>
      tpu.vector_store %arg9[%c0_26, %c0_27], %31 {strides = array<i32>} : memref<8x128xf32, #tpu.memory_space<vmem>>, vector<8x128xf32>,
    } else {
    }
    return
  }
  func.func @transform_0(%arg0: i32, %arg1: i32) -> (i32, i32) {
    %c0_i32 = arith.constant 0 : i32
    return %arg0, %arg1 : i32, i32
  }
  func.func @transform_1(%arg0: i32, %arg1: i32) -> (i32, i32) {
    %c0_i32 = arith.constant 0 : i32
    %c0_i32_0 = arith.constant 0 : i32
    return %arg1, %c0_i32 : i32, i32
  }
  func.func @transform_2(%arg0: i32, %arg1: i32) -> (i32, i32) {
    %c0_i32 = arith.constant 0 : i32
    %c0_i32_0 = arith.constant 0 : i32
    %c0_i32_1 = arith.constant 0 : i32
    return %c0_i32, %c0_i32_0 : i32, i32
  }
  func.func @transform_3(%arg0: i32, %arg1: i32) -> (i32, i32) {
    %c0_i32 = arith.constant 0 : i32
    %c0_i32_0 = arith.constant 0 : i32
    %c0_i32_1 = arith.constant 0 : i32
    return %c0_i32, %c0_i32_0 : i32, i32
  }
  func.func @transform_4(%arg0: i32, %arg1: i32) -> (i32, i32) {
    %c0_i32 = arith.constant 0 : i32
    %c0_i32_0 = arith.constant 0 : i32
    %c0_i32_1 = arith.constant 0 : i32
    return %c0_i32, %c0_i32_0 : i32, i32
  }
  func.func @transform_5(%arg0: i32, %arg1: i32) -> (i32, i32) {
    %c0_i32 = arith.constant 0 : i32
    %c0_i32_0 = arith.constant 0 : i32
    %c0_i32_1 = arith.constant 0 : i32
    return %c0_i32, %c0_i32_0 : i32, i32
  }
  func.func @transform_6(%arg0: i32, %arg1: i32) -> (i32, i32) {
    %c0_i32 = arith.constant 0 : i32
    %c0_i32_0 = arith.constant 0 : i32
    %c0_i32_1 = arith.constant 0 : i32
    return %c0_i32, %c0_i32_0 : i32, i32
  }
  func.func @transform_7(%arg0: i32, %arg1: i32) -> (i32, i32) {
    %c0_i32 = arith.constant 0 : i32
    %c0_i32_0 = arith.constant 0 : i32
    return %arg0, %c0_i32 : i32, i32
  }
}

module attributes {stable_mosaic.version = 11 : i64} {
  func.func @_fc_kernel(%arg0: i32, %arg1: i32, %arg2: memref<8x256xbf16, #tpu.memory_space<vmem>>, %arg3: memref<256x128xbf16, #tpu.memory_space<vmem>>, %arg4: memref<1x128xf32, #tpu.memory_space<vmem>>, %arg5: memref<128x128xbf16, #tpu.memory_space<vmem>>, %arg6: memref<1x128xf32, #tpu.memory_space<vmem>>, %arg7: memref<128x128xbf16, #tpu.memory_space<vmem>>, %arg8: memref<1x128xf32, #tpu.memory_space<vmem>>, %arg9: memref<8x128xf32, #tpu.memory_space<vmem>>, %arg10: memref<8x128xf32, #tpu.memory_space<vmem>>) attributes {dimension_semantics = [#tpu.dimension_semantics<parallel>, #tpu.dimension_semantics<arbitrary>], iteration_bounds = array<i64: 1, 1>, scalar_prefetch = 0 : i64, scratch_operands = 1 : i64, tpu.core_type = #tpu.core_type<tc>, window_params = [{transform_indices = @transform_0, window_bounds = array<i64: 8, 256>}, {transform_indices = @transform_1, window_bounds = array<i64: 256, 128>}, {pipeline_mode = #tpu.pipeline_mode<synchronous>, transform_indices = @transform_2, window_bounds = array<i64: 1, 128>}, {pipeline_mode = #tpu.pipeline_mode<synchronous>, transform_indices = @transform_3, window_bounds = array<i64: 128, 128>}, {pipeline_mode = #tpu.pipeline_mode<synchronous>, transform_indices = @transform_4, window_bounds = array<i64: 1, 128>}, {pipeline_mode = #tpu.pipeline_mode<synchronous>, transform_indices = @transform_5, window_bounds = array<i64: 128, 128>}, {pipeline_mode = #tpu.pipeline_mode<synchronous>, transform_indices = @transform_6, window_bounds = array<i64: 1, 128>}, {transform_indices = @transform_7, window_bounds = array<i64: 8, 128>}]} {
    %c0_i32 = arith.constant 0 : i32
    %0 = arith.cmpi eq, %arg1, %c0_i32 : i32
    %1 = arith.extui %0 : i1 to i32
    %c0_i32_0 = arith.constant 0 : i32
    %2 = arith.cmpi ne, %1, %c0_i32_0 : i32
    scf.if %2 {
      %cst_10 = arith.constant 0.000000e+00 : f32
      %12 = vector.broadcast %cst_10 : f32 to vector<8x128xf32>
      %c0_11 = arith.constant 0 : index
      %c0_12 = arith.constant 0 : index
      %13 = vector.load %arg10[%c0_11, %c0_12] : memref<8x128xf32, #tpu.memory_space<vmem>>, vector<8x128xf32>
      tpu.vector_store %arg10[%c0_11, %c0_12], %12 {strides = array<i32>} : memref<8x128xf32, #tpu.memory_space<vmem>>, vector<8x128xf32>,
    } else {
    }
    %c0 = arith.constant 0 : index
    %c0_1 = arith.constant 0 : index
    %3 = vector.load %arg10[%c0, %c0_1] : memref<8x128xf32, #tpu.memory_space<vmem>>, vector<8x128xf32>
    %c0_2 = arith.constant 0 : index
    %c0_3 = arith.constant 0 : index
    %4 = vector.load %arg2[%c0_2, %c0_3] : memref<8x256xbf16, #tpu.memory_space<vmem>>, vector<8x256xbf16>
    %c0_4 = arith.constant 0 : index
    %c0_5 = arith.constant 0 : index
    %5 = vector.load %arg3[%c0_4, %c0_5] : memref<256x128xbf16, #tpu.memory_space<vmem>>, vector<256x128xbf16>
    %cst = arith.constant dense<0.000000e+00> : vector<8x128xf32>
    %6 = tpu.matmul %4, %5, %cst {dimension_numbers = #tpu.dot_dimension_numbers<[1], [0], [0], [1], [0, 0, 1, 1], [], []>} : vector<8x256xbf16>, vector<256x128xbf16>, vector<8x128xf32> -> vector<8x128xf32>
    %7 = arith.addf %3, %6 : vector<8x128xf32>
    %c0_6 = arith.constant 0 : index
    %c0_7 = arith.constant 0 : index
    %8 = vector.load %arg10[%c0_6, %c0_7] : memref<8x128xf32, #tpu.memory_space<vmem>>, vector<8x128xf32>
    tpu.vector_store %arg10[%c0_6, %c0_7], %7 {strides = array<i32>} : memref<8x128xf32, #tpu.memory_space<vmem>>, vector<8x128xf32>,
    %c0_i32_8 = arith.constant 0 : i32
    %9 = arith.cmpi eq, %arg1, %c0_i32_8 : i32
    %10 = arith.extui %9 : i1 to i32
    %c0_i32_9 = arith.constant 0 : i32
    %11 = arith.cmpi ne, %10, %c0_i32_9 : i32
    scf.if %11 {
      %c0_10 = arith.constant 0 : index
      %c0_11 = arith.constant 0 : index
      %12 = vector.load %arg10[%c0_10, %c0_11] : memref<8x128xf32, #tpu.memory_space<vmem>>, vector<8x128xf32>
      %c0_12 = arith.constant 0 : index
      %c0_13 = arith.constant 0 : index
      %13 = vector.load %arg4[%c0_12, %c0_13] : memref<1x128xf32, #tpu.memory_space<vmem>>, vector<1x128xf32>
      %14 = vector.broadcast %13 : vector<1x128xf32> to vector<8x128xf32>
      %15 = arith.addf %12, %14 : vector<8x128xf32>
      %cst_14 = arith.constant 0.000000e+00 : f32
      %16 = vector.broadcast %cst_14 : f32 to vector<8x128xf32>
      %17 = arith.maximumf %15, %16 : vector<8x128xf32>
      %18 = arith.truncf %17 : vector<8x128xf32> to vector<8x128xbf16>
      %c0_15 = arith.constant 0 : index
      %c0_16 = arith.constant 0 : index
      %19 = vector.load %arg5[%c0_15, %c0_16] : memref<128x128xbf16, #tpu.memory_space<vmem>>, vector<128x128xbf16>
      %cst_17 = arith.constant dense<0.000000e+00> : vector<8x128xf32>
      %20 = tpu.matmul %18, %19, %cst_17 {dimension_numbers = #tpu.dot_dimension_numbers<[1], [0], [0], [1], [0, 0, 1, 1], [], []>} : vector<8x128xbf16>, vector<128x128xbf16>, vector<8x128xf32> -> vector<8x128xf32>
      %c0_18 = arith.constant 0 : index
      %c0_19 = arith.constant 0 : index
      %21 = vector.load %arg6[%c0_18, %c0_19] : memref<1x128xf32, #tpu.memory_space<vmem>>, vector<1x128xf32>
      %22 = vector.broadcast %21 : vector<1x128xf32> to vector<8x128xf32>
      %23 = arith.addf %20, %22 : vector<8x128xf32>
      %cst_20 = arith.constant 0.000000e+00 : f32
      %24 = vector.broadcast %cst_20 : f32 to vector<8x128xf32>
      %25 = arith.maximumf %23, %24 : vector<8x128xf32>
      %26 = arith.truncf %25 : vector<8x128xf32> to vector<8x128xbf16>
      %c0_21 = arith.constant 0 : index
      %c0_22 = arith.constant 0 : index
      %27 = vector.load %arg7[%c0_21, %c0_22] : memref<128x128xbf16, #tpu.memory_space<vmem>>, vector<128x128xbf16>
      %cst_23 = arith.constant dense<0.000000e+00> : vector<8x128xf32>
      %28 = tpu.matmul %26, %27, %cst_23 {dimension_numbers = #tpu.dot_dimension_numbers<[1], [0], [0], [1], [0, 0, 1, 1], [], []>} : vector<8x128xbf16>, vector<128x128xbf16>, vector<8x128xf32> -> vector<8x128xf32>
      %c0_24 = arith.constant 0 : index
      %c0_25 = arith.constant 0 : index
      %29 = vector.load %arg8[%c0_24, %c0_25] : memref<1x128xf32, #tpu.memory_space<vmem>>, vector<1x128xf32>
      %30 = vector.broadcast %29 : vector<1x128xf32> to vector<8x128xf32>
      %31 = arith.addf %28, %30 : vector<8x128xf32>
      %c0_26 = arith.constant 0 : index
      %c0_27 = arith.constant 0 : index
      %32 = vector.load %arg9[%c0_26, %c0_27] : memref<8x128xf32, #tpu.memory_space<vmem>>, vector<8x128xf32>
      tpu.vector_store %arg9[%c0_26, %c0_27], %31 {strides = array<i32>} : memref<8x128xf32, #tpu.memory_space<vmem>>, vector<8x128xf32>,
    } else {
    }
    return
  }
  func.func @transform_0(%arg0: i32, %arg1: i32) -> (i32, i32) {
    %c0_i32 = arith.constant 0 : i32
    return %arg0, %arg1 : i32, i32
  }
  func.func @transform_1(%arg0: i32, %arg1: i32) -> (i32, i32) {
    %c0_i32 = arith.constant 0 : i32
    %c0_i32_0 = arith.constant 0 : i32
    return %arg1, %c0_i32 : i32, i32
  }
  func.func @transform_2(%arg0: i32, %arg1: i32) -> (i32, i32) {
    %c0_i32 = arith.constant 0 : i32
    %c0_i32_0 = arith.constant 0 : i32
    %c0_i32_1 = arith.constant 0 : i32
    return %c0_i32, %c0_i32_0 : i32, i32
  }
  func.func @transform_3(%arg0: i32, %arg1: i32) -> (i32, i32) {
    %c0_i32 = arith.constant 0 : i32
    %c0_i32_0 = arith.constant 0 : i32
    %c0_i32_1 = arith.constant 0 : i32
    return %c0_i32, %c0_i32_0 : i32, i32
  }
  func.func @transform_4(%arg0: i32, %arg1: i32) -> (i32, i32) {
    %c0_i32 = arith.constant 0 : i32
    %c0_i32_0 = arith.constant 0 : i32
    %c0_i32_1 = arith.constant 0 : i32
    return %c0_i32, %c0_i32_0 : i32, i32
  }
  func.func @transform_5(%arg0: i32, %arg1: i32) -> (i32, i32) {
    %c0_i32 = arith.constant 0 : i32
    %c0_i32_0 = arith.constant 0 : i32
    %c0_i32_1 = arith.constant 0 : i32
    return %c0_i32, %c0_i32_0 : i32, i32
  }
  func.func @transform_6(%arg0: i32, %arg1: i32) -> (i32, i32) {
    %c0_i32 = arith.constant 0 : i32
    %c0_i32_0 = arith.constant 0 : i32
    %c0_i32_1 = arith.constant 0 : i32
    return %c0_i32, %c0_i32_0 : i32, i32
  }
  func.func @transform_7(%arg0: i32, %arg1: i32) -> (i32, i32) {
    %c0_i32 = arith.constant 0 : i32
    %c0_i32_0 = arith.constant 0 : i32
    return %arg0, %c0_i32 : i32, i32
  }
}

</mosaic_0001>

<bundles_post_ra>
// kernel: tpu_custom_call.1
= control target key start
LH: loop header
LB: loop body
LE: loop exit
PB: predicated region body
PF: predicated region fallthrough
CT: control target
= control target key end

     0   :  { %12 = vsyncpa [#allocation4], 0  ;;  %s944_s0 = inlined_call_operand.hbm [shape: bf16[8,256], index: 0, kind: input, shape index: {}]   ;;  %s945_s1 = inlined_call_operand.hbm [shape: bf16[256,128], index: 1, kind: input, shape index: {}]   ;;  %s946_s2 = inlined_call_operand.vmem [shape: f32[1,128], index: 2, kind: input, shape index: {}]   ;;  %s947_s3 = inlined_call_operand.hbm [shape: bf16[128,128], index: 3, kind: input, shape index: {}]   ;;  %s948_s4 = inlined_call_operand.vmem [shape: f32[1,128], index: 4, kind: input, shape index: {}]   ;;  %s949_s5 = inlined_call_operand.hbm [shape: bf16[128,128], index: 5, kind: input, shape index: {}]   ;;  %s950_s6 = inlined_call_operand.vmem [shape: f32[1,128], index: 6, kind: input, shape index: {}]   ;;  %s951_s7 = inlined_call_operand.hbm [shape: f32[8,128], index: 7, kind: output, shape index: {}]  }
   0x1   :  { %13 = vsyncpa [#allocation7], 0 }
   0x2   :  { %14 = vsyncpa [#allocation10], 0 }
   0x3   :  { %15 = vsyncpa [#allocation5], 0  ;;  %s799_s24 = smov [#allocation6]   ;;  %s681_s28 = scalar_lea.hbm %s945_s1, 2048 }
   0x4   :  { %s31_s25 = sshll.u32 %s799_s24, 4  ;;  %p682_p0 = scmp.ne.s32.totalorder %s945_s1, %s681_s28  ;;  %s32_s25 = int_to_ptr.vmem [resolvable:$true] %s31_s25 }
   0x5   :  { %p685_p1 = scmp.lt.u32.totalorder %s681_s28, %s945_s1 }
   0x7   :  { %p687_p2 = pnand %p685_p1, %p682_p0 }
   0x9   :  { %690 = shalt.err (!%p687_p2)
}
   0xa   :  { %s691_s10 = scalar_lea.vmem %s32_s25, 2048  ;;  %p696_p4 = scmp.lt.s32.totalorder %s32_s25, %s32_s25 }
   0xb   :  { %p692_p3 = scmp.ne.s32.totalorder %s32_s25, %s691_s10  ;;  %p697_p5 = scmp.lt.s32.totalorder %s691_s10, %s691_s10 }
   0xd   :  { %p698_p6 = por %p697_p5, %p696_p4 }
   0xf   :  { %p699_p7 = pnand %p698_p6, %p692_p3 }
  0x11   :  { %702 = shalt.err (!%p699_p7)
}
  0x12   :  { %s800_s11 = smov 64   ;;  %s801_s12 = smov 4  }
  0x13   :  { %37 = dma.hbm_to_vmem [thread:$0]  %s945_s1, 2048, %s32_s25, [#allocation7], %s800_s11, %s800_s11, %s801_s12  }
  0x14   :  { %s802_s15 = smov [#allocation3]   ;;  %s803_s17 = smov [#allocation8]  }
  0x15   :  { %s22_s16 = sshll.u32 %s802_s15, 4  ;;  %s45_s18 = sshll.u32 %s803_s17, 4  ;;  %s23_s16 = int_to_ptr.vmem [resolvable:$true] %s22_s16  ;;  %s46_s18 = int_to_ptr.vmem [resolvable:$true] %s45_s18 }
  0x16   :  { %s703_s21 = scalar_lea.hbm %s944_s0, 128 }
  0x17   :  { %p704_p8 = scmp.ne.s32.totalorder %s944_s0, %s703_s21  ;;  %p707_p9 = scmp.lt.u32.totalorder %s703_s21, %s944_s0 }
  0x19   :  { %p709_p10 = pnand %p707_p9, %p704_p8 }
  0x1b   :  { %712 = shalt.err (!%p709_p10)
}
  0x1c   :  { %s713_s1 = scalar_lea.vmem %s23_s16, 128  ;;  %p718_p12 = scmp.lt.s32.totalorder %s23_s16, %s23_s16 }
  0x1d   :  { %p714_p11 = scmp.ne.s32.totalorder %s23_s16, %s713_s1  ;;  %p719_p13 = scmp.lt.s32.totalorder %s713_s1, %s713_s1 }
  0x1f   :  { %p720_p0 = por %p719_p13, %p718_p12 }
  0x21   :  { %p721_p1 = pnand %p720_p0, %p714_p11 }
  0x23   :  { %724 = shalt.err (!%p721_p1)
}
  0x24   :  { %25 = dma.hbm_to_vmem [thread:$0]  %s944_s0, 128, %s23_s16, [#allocation4]  }
  0x25   :  { %s725_s30 = scalar_lea.hbm %s947_s3, 1024 }
  0x26   :  { %p726_p2 = scmp.ne.s32.totalorder %s947_s3, %s725_s30  ;;  %p729_p3 = scmp.lt.u32.totalorder %s725_s30, %s947_s3 }
  0x28   :  { %p731_p4 = pnand %p729_p3, %p726_p2 }
  0x2a   :  { %734 = shalt.err (!%p731_p4)
}
  0x2b   :  { %s735_s14 = scalar_lea.vmem %s46_s18, 1024  ;;  %p740_p6 = scmp.lt.s32.totalorder %s46_s18, %s46_s18 }
  0x2c   :  { %p736_p5 = scmp.ne.s32.totalorder %s46_s18, %s735_s14  ;;  %p741_p7 = scmp.lt.s32.totalorder %s735_s14, %s735_s14 }
  0x2e   :  { %p742_p8 = por %p741_p7, %p740_p6 }
  0x30   :  { %p743_p9 = pnand %p742_p8, %p736_p5 }
  0x32   :  { %746 = shalt.err (!%p743_p9)
}
  0x33   :  { %51 = dma.hbm_to_vmem [thread:$0]  %s947_s3, 1024, %s46_s18, [#allocation7], %s800_s11, %s800_s11, %s801_s12  }
  0x34   :  { %s804_s16 = smov [#allocation9]   ;;  %s747_s21 = scalar_lea.hbm %s949_s5, 1024 }
  0x35   :  { %s59_s17 = sshll.u32 %s804_s16, 4  ;;  %p748_p10 = scmp.ne.s32.totalorder %s949_s5, %s747_s21  ;;  %s60_s17 = int_to_ptr.vmem [resolvable:$true] %s59_s17 }
  0x36   :  { %p751_p11 = scmp.lt.u32.totalorder %s747_s21, %s949_s5 }
  0x38   :  { %p753_p12 = pnand %p751_p11, %p748_p10 }
  0x3a   :  { %756 = shalt.err (!%p753_p12)
}
  0x3b   :  { %s757_s1 = scalar_lea.vmem %s60_s17, 1024  ;;  %p762_p0 = scmp.lt.s32.totalorder %s60_s17, %s60_s17 }
  0x3c   :  { %p758_p13 = scmp.ne.s32.totalorder %s60_s17, %s757_s1  ;;  %p763_p1 = scmp.lt.s32.totalorder %s757_s1, %s757_s1 }
  0x3e   :  { %p764_p2 = por %p763_p1, %p762_p0 }
  0x40   :  { %p765_p3 = pnand %p764_p2, %p758_p13 }
  0x42   :  { %768 = shalt.err (!%p765_p3)
}
  0x43   :  { %65 = dma.hbm_to_vmem [thread:$0]  %s949_s5, 1024, %s60_s17, [#allocation10], %s800_s11, %s800_s11, %s801_s12  }
  0x44   :  { %791 = dma.done.wait [#allocation4], 128  }
  0x45   :  { %792 = vsyncadd [#allocation4], 4294967168 }
  0x46   :  { %793 = dma.done.wait [#allocation7], 3072  }
  0x47   :  { %794 = vsyncadd [#allocation7], 4294964224 }
  0x48   :  { %795 = dma.done.wait [#allocation10], 1024  }
  0x49   :  { %796 = vsyncadd [#allocation10], 4294966272  ;;  %v805_v0 = vmov 0.0   ;;  %v647_v1 = vld [vmem:[#allocation6 + $0x40] sm:$0xff]   ;;  %v649_v3 = vld [vmem:[#allocation6 + $0x48] sm:$0xff]   ;;  %vm806_vm0 = vmmov 0  }
  0x4a   :  { %598 = vmatprep.subr.bf16.mxu1 %v805_v0  ;;  %v648_v2 = vld [vmem:[#allocation6] sm:$0xff]   ;;  %558 = vmatprep.subr.bf16.mxu0 %v647_v1  ;;  %v650_v4 = vld [vmem:[#allocation6 + $0x8] sm:$0xff]   ;;  %v651_v5 = vld [vmem:[#allocation6 + $0x50] sm:$0xff]   ;;  %s807_s28 = smov [#allocation11]  }
  0x4b   :  { %559 = vmatpush3.bf16.msra.mxu0 %v648_v2  ;;  %v652_v6 = vld [vmem:[#allocation6 + $0x10] sm:$0xff]   ;;  %v653_v7 = vld [vmem:[#allocation6 + $0x58] sm:$0xff]   ;;  %v655_v9 = vld [vmem:[#allocation6 + $0x60] sm:$0xff]   ;;  %614 = vmatprep.mubr.msk.bf16.mxu1 %vm806_vm0, %v805_v0  ;;  %s510_s29 = sshll.u32 %s807_s28, 4  ;;  %s511_s29 = int_to_ptr.vmem [resolvable:$true] %s510_s29 }
  0x4c   :  { %560 = vmatprep.subr.bf16.mxu0 %v649_v3  ;;  %v654_v8 = vld [vmem:[#allocation6 + $0x18] sm:$0xff]   ;;  %v656_v10 = vld [vmem:[#allocation6 + $0x20] sm:$0xff]   ;;  %v657_v11 = vld [vmem:[#allocation6 + $0x68] sm:$0xff]   ;;  %p774_p5 = scmp.lt.s32.totalorder %s511_s29, %s511_s29 }
  0x4d   :  { %v87_v12 = vld [vmem:[#allocation3] sm:$0xff]  ;;  %v665_v14 = vld [vmem:[#allocation8] sm:$0xff]   ;;  %v658_v15 = vld [vmem:[#allocation6 + $0x28] sm:$0xff]  }
  0x4e   :  { %v522_v13 = vcombine.high %v87_v12, %v87_v12  ;;  %v659_v16 = vld [vmem:[#allocation6 + $0x70] sm:$0xff]   ;;  %599 = vmatpush3.bf16.msra.mxu1 %v665_v14  ;;  %v666_v17 = vld [vmem:[#allocation8 + $0x8] sm:$0xff]   ;;  %v661_v19 = vld [vmem:[#allocation6 + $0x78] sm:$0xff]   ;;  %v521_v23 = vcombine.low %v87_v12, %v87_v12 }
  0x4f   :  { %561 = vmatpush3.bf16.msra.mxu0 %v650_v4  ;;  %v660_v18 = vld [vmem:[#allocation6 + $0x30] sm:$0xff]   ;;  %600 = vmatprep.subr.bf16.mxu1 %v805_v0  ;;  %v662_v21 = vld [vmem:[#allocation6 + $0x38] sm:$0xff]   ;;  %v669_v24 = vld [vmem:[#allocation8 + $0x20] sm:$0xff]  }
  0x50   :  { %562 = vmatprep.subr.bf16.mxu0 %v651_v5  ;;  %255 = vmatprep.mubr.bf16.mxu0 %v522_v13  ;;  %v667_v20 = vld [vmem:[#allocation8 + $0x10] sm:$0xff]   ;;  %v668_v22 = vld [vmem:[#allocation8 + $0x18] sm:$0xff]   ;;  %v670_v25 = vld [vmem:[#allocation8 + $0x28] sm:$0xff]  }
  0x51   :  { %v671_v26 = vld [vmem:[#allocation8 + $0x30] sm:$0xff]   ;;  %v672_v27 = vld [vmem:[#allocation8 + $0x38] sm:$0xff]   ;;  %v673_v28 = vld [vmem:[#allocation9] sm:$0xff]  }
  0x52   :  { %601 = vmatpush3.bf16.msra.mxu1 %v666_v17  ;;  %v674_v29 = vld [vmem:[#allocation9 + $0x8] sm:$0xff]   ;;  %v675_v30 = vld [vmem:[#allocation9 + $0x10] sm:$0xff]   ;;  %v676_v31 = vld [vmem:[#allocation9 + $0x18] sm:$0xff]  }
  0x53   :  { %563 = vmatpush3.bf16.msra.mxu0 %v652_v6  ;;  %602 = vmatprep.subr.bf16.mxu1 %v805_v0  ;;  %v677_v32 = vld [vmem:[#allocation9 + $0x20] sm:$0xff]   ;;  %v678_v33 = vld [vmem:[#allocation9 + $0x28] sm:$0xff]   ;;  %v539_v36 = vld [vmem:[%s946_s2] ss:$0 sm:$0xff] }
  0x54   :  { %564 = vmatprep.subr.bf16.mxu0 %v653_v7  ;;  %v679_v43 = vld [vmem:[#allocation9 + $0x30] sm:$0xff]   ;;  %v680_v44 = vld [vmem:[#allocation9 + $0x38] sm:$0xff]  }
  0x55   :  { %v540_v45 = vld [vmem:[%s948_s4] ss:$0 sm:$0xff]  ;;  %s769_s4 = scalar_lea.vmem %s511_s29, 128 }
  0x56   :  { %603 = vmatpush3.bf16.msra.mxu1 %v667_v20  ;;  %v549_v53 = vld [vmem:[%s950_s6] ss:$0 sm:$0xff]  ;;  %p770_p4 = scmp.ne.s32.totalorder %s511_s29, %s769_s4  ;;  %p775_p6 = scmp.lt.s32.totalorder %s769_s4, %s769_s4 }
  0x57   :  { %565 = vmatpush3.bf16.msra.mxu0 %v654_v8  ;;  %604 = vmatprep.subr.bf16.mxu1 %v805_v0 }
  0x58   :  { %566 = vmatprep.subr.bf16.mxu0 %v655_v9  ;;  %p776_p7 = por %p775_p6, %p774_p5 }
  0x5a   :  { %605 = vmatpush3.bf16.msra.mxu1 %v668_v22  ;;  %p777_p8 = pnand %p776_p7, %p770_p4 }
  0x5b   :  { %567 = vmatpush3.bf16.msra.mxu0 %v656_v10  ;;  %606 = vmatprep.subr.bf16.mxu1 %v805_v0 }
  0x5c   :  { %568 = vmatprep.subr.bf16.mxu0 %v657_v11 }
  0x5e   :  { %607 = vmatpush3.bf16.msra.mxu1 %v669_v24 }
  0x5f   :  { %569 = vmatpush3.bf16.msra.mxu0 %v658_v15  ;;  %608 = vmatprep.subr.bf16.mxu1 %v805_v0 }
  0x60   :  { %570 = vmatprep.subr.bf16.mxu0 %v659_v16 }
  0x62   :  { %609 = vmatpush3.bf16.msra.mxu1 %v670_v25 }
  0x63   :  { %571 = vmatpush3.bf16.msra.mxu0 %v660_v18  ;;  %610 = vmatprep.subr.bf16.mxu1 %v805_v0 }
  0x64   :  { %572 = vmatprep.subr.bf16.mxu0 %v661_v19 }
  0x66   :  { %611 = vmatpush3.bf16.msra.mxu1 %v671_v26 }
  0x67   :  { %573 = vmatpush3.bf16.msra.mxu0 %v662_v21  ;;  %612 = vmatprep.subr.bf16.mxu1 %v805_v0 }
  0x68   :  { %618 = vmatprep.subr.bf16.mxu0 %v805_v0 }
  0x6a   :  { %256 = vmatmul.mubr.bf16.vlgmr.msra.gmra.mrb[0].mxu0 %v521_v23  ;;  %613 = vmatpush3.bf16.msra.mxu1 %v672_v27 }
  0x6b   :  { %634 = vmatprep.mubr.msk.bf16.mxu0 %vm806_vm0, %v805_v0  ;;  %619 = vmatpush3.bf16.msra.mxu0 %v673_v28 }
  0x6c   :  { %620 = vmatprep.subr.bf16.mxu0 %v805_v0 }
  0x6f   :  { %621 = vmatpush3.bf16.msra.mxu0 %v674_v29 }
  0x70   :  { %622 = vmatprep.subr.bf16.mxu0 %v805_v0 }
  0x73   :  { %623 = vmatpush3.bf16.msra.mxu0 %v675_v30 }
  0x74   :  { %624 = vmatprep.subr.bf16.mxu0 %v805_v0 }
  0x77   :  { %625 = vmatpush3.bf16.msra.mxu0 %v676_v31 }
  0x78   :  { %626 = vmatprep.subr.bf16.mxu0 %v805_v0 }
  0x7b   :  { %627 = vmatpush3.bf16.msra.mxu0 %v677_v32 }
  0x7c   :  { %628 = vmatprep.subr.bf16.mxu0 %v805_v0 }
  0x7f   :  { %629 = vmatpush3.bf16.msra.mxu0 %v678_v33 }
  0x80   :  { %630 = vmatprep.subr.bf16.mxu0 %v805_v0 }
  0x83   :  { %631 = vmatpush3.bf16.msra.mxu0 %v679_v43 }
  0x84   :  { %632 = vmatprep.subr.bf16.mxu0 %v805_v0 }
  0x87   :  { %633 = vmatpush3.bf16.msra.mxu0 %v680_v44 }
 0x13d   :  { %v574_v34 = vpop.f32.mrb[0].mxu0 }
 0x13e   :  { %v575_v35 = vpop.f32.mrb[1].mxu0 }
 0x13f   :  { %v576_v37 = vadd.f32 %v575_v35, %v574_v34  ;;  %v577_v38 = vpop.f32.mrb[2].mxu0 }
 0x140   :  { %v578_v39 = vpop.f32.mrb[3].mxu0 }
 0x141   :  { %v276_v40 = vadd.f32 %v576_v37, %v539_v36 }
 0x143   :  { %v277_v41 = vmax.f32 %v276_v40, 0.0 }
 0x145   :  { %v278_v42 = vpack.c.bf16 %v277_v41, %v277_v41 }
 0x147   :  { %615 = vmatmul.mubr.bf16.vlgmr.msra.gmra.mrb[0].mxu1 %v278_v42 }
 0x21a   :  { %v384_v46 = vpop.f32.mrb[0].mxu1 }
 0x21b   :  { %v385_v47 = vadd.f32 %v540_v45, %v384_v46  ;;  %v616_v48 = vpop.f32.mrb[1].mxu1 }
 0x21c   :  { %v387_v49 = vpop.f32.mrb[2].mxu1 }
 0x21d   :  { %v390_v50 = vmax.f32 %v385_v47, 0.0  ;;  %v617_v51 = vpop.f32.mrb[3].mxu1 }
 0x21f   :  { %v391_v52 = vpack.c.bf16 %v390_v50, %v390_v50 }
 0x221   :  { %635 = vmatmul.mubr.bf16.vlgmr.msra.gmra.mrb[4].mxu0 %v391_v52 }
 0x2f4   :  { %v497_v54 = vpop.f32.mrb[4].mxu0 }
 0x2f5   :  { %v498_v55 = vadd.f32 %v549_v53, %v497_v54  ;;  %v636_v56 = vpop.f32.mrb[5].mxu0 }
 0x2f6   :  { %v500_v57 = vpop.f32.mrb[6].mxu0 }
 0x2f7   :  { %503 = vst [vmem:[#allocation11] sm:$0xff] %v498_v55  ;;  %v637_v58 = vpop.f32.mrb[7].mxu0 }
 0x2f8   :  { %780 = shalt.err (!%p777_p8)
}
 0x2f9   :  { %s781_s6 = scalar_lea.hbm %s951_s7, 128 }
 0x2fa   :  { %p782_p9 = scmp.ne.s32.totalorder %s951_s7, %s781_s6  ;;  %p785_p10 = scmp.lt.u32.totalorder %s781_s6, %s951_s7 }
 0x2fc   :  { %p787_p11 = pnand %p785_p10, %p782_p9 }
 0x2fe   :  { %790 = shalt.err (!%p787_p11)
}
 0x2ff   :  { %513 = dma.vmem_to_hbm [thread:$0]  %s511_s29, 128, %s951_s7, [#allocation5]  }
 0x300   :  { %797 = dma.done.wait [#allocation5], 128  }
 0x301   :  { %798 = vsyncadd [#allocation5], 4294967168 }
 0x302   :  { %517 = vsyncpa [#allocation4], 1 }
 0x303   :  { %518 = vsyncpa [#allocation7], 1 }
 0x304   :  { %519 = vsyncpa [#allocation10], 1 }
 0x305   :  { %520 = vsyncpa [#allocation5], 1 }

// kernel: tpu_custom_call.1
= control target key start
LH: loop header
LB: loop body
LE: loop exit
PB: predicated region body
PF: predicated region fallthrough
CT: control target
= control target key end

     0   :  { %12 = vsyncpa [#allocation4], 0  ;;  %s944_s0 = inlined_call_operand.hbm [shape: bf16[8,256], index: 0, kind: input, shape index: {}]   ;;  %s945_s1 = inlined_call_operand.hbm [shape: bf16[256,128], index: 1, kind: input, shape index: {}]   ;;  %s946_s2 = inlined_call_operand.vmem [shape: f32[1,128], index: 2, kind: input, shape index: {}]   ;;  %s947_s3 = inlined_call_operand.hbm [shape: bf16[128,128], index: 3, kind: input, shape index: {}]   ;;  %s948_s4 = inlined_call_operand.vmem [shape: f32[1,128], index: 4, kind: input, shape index: {}]   ;;  %s949_s5 = inlined_call_operand.hbm [shape: bf16[128,128], index: 5, kind: input, shape index: {}]   ;;  %s950_s6 = inlined_call_operand.vmem [shape: f32[1,128], index: 6, kind: input, shape index: {}]   ;;  %s951_s7 = inlined_call_operand.hbm [shape: f32[8,128], index: 7, kind: output, shape index: {}]  }
   0x1   :  { %13 = vsyncpa [#allocation7], 0 }
   0x2   :  { %14 = vsyncpa [#allocation10], 0 }
   0x3   :  { %15 = vsyncpa [#allocation5], 0  ;;  %s799_s24 = smov [#allocation6]   ;;  %s681_s28 = scalar_lea.hbm %s945_s1, 2048 }
   0x4   :  { %s31_s25 = sshll.u32 %s799_s24, 4  ;;  %p682_p0 = scmp.ne.s32.totalorder %s945_s1, %s681_s28  ;;  %s32_s25 = int_to_ptr.vmem [resolvable:$true] %s31_s25 }
   0x5   :  { %p685_p1 = scmp.lt.u32.totalorder %s681_s28, %s945_s1 }
   0x7   :  { %p687_p2 = pnand %p685_p1, %p682_p0 }
   0x9   :  { %690 = shalt.err (!%p687_p2)
}
   0xa   :  { %s691_s10 = scalar_lea.vmem %s32_s25, 2048  ;;  %p696_p4 = scmp.lt.s32.totalorder %s32_s25, %s32_s25 }
   0xb   :  { %p692_p3 = scmp.ne.s32.totalorder %s32_s25, %s691_s10  ;;  %p697_p5 = scmp.lt.s32.totalorder %s691_s10, %s691_s10 }
   0xd   :  { %p698_p6 = por %p697_p5, %p696_p4 }
   0xf   :  { %p699_p7 = pnand %p698_p6, %p692_p3 }
  0x11   :  { %702 = shalt.err (!%p699_p7)
}
  0x12   :  { %s800_s11 = smov 64   ;;  %s801_s12 = smov 4  }
  0x13   :  { %37 = dma.hbm_to_vmem [thread:$0]  %s945_s1, 2048, %s32_s25, [#allocation7], %s800_s11, %s800_s11, %s801_s12  }
  0x14   :  { %s802_s15 = smov [#allocation3]   ;;  %s803_s17 = smov [#allocation8]  }
  0x15   :  { %s22_s16 = sshll.u32 %s802_s15, 4  ;;  %s45_s18 = sshll.u32 %s803_s17, 4  ;;  %s23_s16 = int_to_ptr.vmem [resolvable:$true] %s22_s16  ;;  %s46_s18 = int_to_ptr.vmem [resolvable:$true] %s45_s18 }
  0x16   :  { %s703_s21 = scalar_lea.hbm %s944_s0, 128 }
  0x17   :  { %p704_p8 = scmp.ne.s32.totalorder %s944_s0, %s703_s21  ;;  %p707_p9 = scmp.lt.u32.totalorder %s703_s21, %s944_s0 }
  0x19   :  { %p709_p10 = pnand %p707_p9, %p704_p8 }
  0x1b   :  { %712 = shalt.err (!%p709_p10)
}
  0x1c   :  { %s713_s1 = scalar_lea.vmem %s23_s16, 128  ;;  %p718_p12 = scmp.lt.s32.totalorder %s23_s16, %s23_s16 }
  0x1d   :  { %p714_p11 = scmp.ne.s32.totalorder %s23_s16, %s713_s1  ;;  %p719_p13 = scmp.lt.s32.totalorder %s713_s1, %s713_s1 }
  0x1f   :  { %p720_p0 = por %p719_p13, %p718_p12 }
  0x21   :  { %p721_p1 = pnand %p720_p0, %p714_p11 }
  0x23   :  { %724 = shalt.err (!%p721_p1)
}
  0x24   :  { %25 = dma.hbm_to_vmem [thread:$0]  %s944_s0, 128, %s23_s16, [#allocation4]  }
  0x25   :  { %s725_s30 = scalar_lea.hbm %s947_s3, 1024 }
  0x26   :  { %p726_p2 = scmp.ne.s32.totalorder %s947_s3, %s725_s30  ;;  %p729_p3 = scmp.lt.u32.totalorder %s725_s30, %s947_s3 }
  0x28   :  { %p731_p4 = pnand %p729_p3, %p726_p2 }
  0x2a   :  { %734 = shalt.err (!%p731_p4)
}
  0x2b   :  { %s735_s14 = scalar_lea.vmem %s46_s18, 1024  ;;  %p740_p6 = scmp.lt.s32.totalorder %s46_s18, %s46_s18 }
  0x2c   :  { %p736_p5 = scmp.ne.s32.totalorder %s46_s18, %s735_s14  ;;  %p741_p7 = scmp.lt.s32.totalorder %s735_s14, %s735_s14 }
  0x2e   :  { %p742_p8 = por %p741_p7, %p740_p6 }
  0x30   :  { %p743_p9 = pnand %p742_p8, %p736_p5 }
  0x32   :  { %746 = shalt.err (!%p743_p9)
}
  0x33   :  { %51 = dma.hbm_to_vmem [thread:$0]  %s947_s3, 1024, %s46_s18, [#allocation7], %s800_s11, %s800_s11, %s801_s12  }
  0x34   :  { %s804_s16 = smov [#allocation9]   ;;  %s747_s21 = scalar_lea.hbm %s949_s5, 1024 }
  0x35   :  { %s59_s17 = sshll.u32 %s804_s16, 4  ;;  %p748_p10 = scmp.ne.s32.totalorder %s949_s5, %s747_s21  ;;  %s60_s17 = int_to_ptr.vmem [resolvable:$true] %s59_s17 }
  0x36   :  { %p751_p11 = scmp.lt.u32.totalorder %s747_s21, %s949_s5 }
  0x38   :  { %p753_p12 = pnand %p751_p11, %p748_p10 }
  0x3a   :  { %756 = shalt.err (!%p753_p12)
}
  0x3b   :  { %s757_s1 = scalar_lea.vmem %s60_s17, 1024  ;;  %p762_p0 = scmp.lt.s32.totalorder %s60_s17, %s60_s17 }
  0x3c   :  { %p758_p13 = scmp.ne.s32.totalorder %s60_s17, %s757_s1  ;;  %p763_p1 = scmp.lt.s32.totalorder %s757_s1, %s757_s1 }
  0x3e   :  { %p764_p2 = por %p763_p1, %p762_p0 }
  0x40   :  { %p765_p3 = pnand %p764_p2, %p758_p13 }
  0x42   :  { %768 = shalt.err (!%p765_p3)
}
  0x43   :  { %65 = dma.hbm_to_vmem [thread:$0]  %s949_s5, 1024, %s60_s17, [#allocation10], %s800_s11, %s800_s11, %s801_s12  }
  0x44   :  { %791 = dma.done.wait [#allocation4], 128  }
  0x45   :  { %792 = vsyncadd [#allocation4], 4294967168 }
  0x46   :  { %793 = dma.done.wait [#allocation7], 3072  }
  0x47   :  { %794 = vsyncadd [#allocation7], 4294964224 }
  0x48   :  { %795 = dma.done.wait [#allocation10], 1024  }
  0x49   :  { %796 = vsyncadd [#allocation10], 4294966272  ;;  %v805_v0 = vmov 0.0   ;;  %v647_v1 = vld [vmem:[#allocation6 + $0x40] sm:$0xff]   ;;  %v649_v3 = vld [vmem:[#allocation6 + $0x48] sm:$0xff]   ;;  %vm806_vm0 = vmmov 0  }
  0x4a   :  { %598 = vmatprep.subr.bf16.mxu1 %v805_v0  ;;  %v648_v2 = vld [vmem:[#allocation6] sm:$0xff]   ;;  %558 = vmatprep.subr.bf16.mxu0 %v647_v1  ;;  %v650_v4 = vld [vmem:[#allocation6 + $0x8] sm:$0xff]   ;;  %v651_v5 = vld [vmem:[#allocation6 + $0x50] sm:$0xff]   ;;  %s807_s28 = smov [#allocation11]  }
  0x4b   :  { %559 = vmatpush3.bf16.msra.mxu0 %v648_v2  ;;  %v652_v6 = vld [vmem:[#allocation6 + $0x10] sm:$0xff]   ;;  %v653_v7 = vld [vmem:[#allocation6 + $0x58] sm:$0xff]   ;;  %v655_v9 = vld [vmem:[#allocation6 + $0x60] sm:$0xff]   ;;  %614 = vmatprep.mubr.msk.bf16.mxu1 %vm806_vm0, %v805_v0  ;;  %s510_s29 = sshll.u32 %s807_s28, 4  ;;  %s511_s29 = int_to_ptr.vmem [resolvable:$true] %s510_s29 }
  0x4c   :  { %560 = vmatprep.subr.bf16.mxu0 %v649_v3  ;;  %v654_v8 = vld [vmem:[#allocation6 + $0x18] sm:$0xff]   ;;  %v656_v10 = vld [vmem:[#allocation6 + $0x20] sm:$0xff]   ;;  %v657_v11 = vld [vmem:[#allocation6 + $0x68] sm:$0xff]   ;;  %p774_p5 = scmp.lt.s32.totalorder %s511_s29, %s511_s29 }
  0x4d   :  { %v87_v12 = vld [vmem:[#allocation3] sm:$0xff]  ;;  %v665_v14 = vld [vmem:[#allocation8] sm:$0xff]   ;;  %v658_v15 = vld [vmem:[#allocation6 + $0x28] sm:$0xff]  }
  0x4e   :  { %v522_v13 = vcombine.high %v87_v12, %v87_v12  ;;  %v659_v16 = vld [vmem:[#allocation6 + $0x70] sm:$0xff]   ;;  %599 = vmatpush3.bf16.msra.mxu1 %v665_v14  ;;  %v666_v17 = vld [vmem:[#allocation8 + $0x8] sm:$0xff]   ;;  %v661_v19 = vld [vmem:[#allocation6 + $0x78] sm:$0xff]   ;;  %v521_v23 = vcombine.low %v87_v12, %v87_v12 }
  0x4f   :  { %561 = vmatpush3.bf16.msra.mxu0 %v650_v4  ;;  %v660_v18 = vld [vmem:[#allocation6 + $0x30] sm:$0xff]   ;;  %600 = vmatprep.subr.bf16.mxu1 %v805_v0  ;;  %v662_v21 = vld [vmem:[#allocation6 + $0x38] sm:$0xff]   ;;  %v669_v24 = vld [vmem:[#allocation8 + $0x20] sm:$0xff]  }
  0x50   :  { %562 = vmatprep.subr.bf16.mxu0 %v651_v5  ;;  %255 = vmatprep.mubr.bf16.mxu0 %v522_v13  ;;  %v667_v20 = vld [vmem:[#allocation8 + $0x10] sm:$0xff]   ;;  %v668_v22 = vld [vmem:[#allocation8 + $0x18] sm:$0xff]   ;;  %v670_v25 = vld [vmem:[#allocation8 + $0x28] sm:$0xff]  }
  0x51   :  { %v671_v26 = vld [vmem:[#allocation8 + $0x30] sm:$0xff]   ;;  %v672_v27 = vld [vmem:[#allocation8 + $0x38] sm:$0xff]   ;;  %v673_v28 = vld [vmem:[#allocation9] sm:$0xff]  }
  0x52   :  { %601 = vmatpush3.bf16.msra.mxu1 %v666_v17  ;;  %v674_v29 = vld [vmem:[#allocation9 + $0x8] sm:$0xff]   ;;  %v675_v30 = vld [vmem:[#allocation9 + $0x10] sm:$0xff]   ;;  %v676_v31 = vld [vmem:[#allocation9 + $0x18] sm:$0xff]  }
  0x53   :  { %563 = vmatpush3.bf16.msra.mxu0 %v652_v6  ;;  %602 = vmatprep.subr.bf16.mxu1 %v805_v0  ;;  %v677_v32 = vld [vmem:[#allocation9 + $0x20] sm:$0xff]   ;;  %v678_v33 = vld [vmem:[#allocation9 + $0x28] sm:$0xff]   ;;  %v539_v36 = vld [vmem:[%s946_s2] ss:$0 sm:$0xff] }
  0x54   :  { %564 = vmatprep.subr.bf16.mxu0 %v653_v7  ;;  %v679_v43 = vld [vmem:[#allocation9 + $0x30] sm:$0xff]   ;;  %v680_v44 = vld [vmem:[#allocation9 + $0x38] sm:$0xff]  }
  0x55   :  { %v540_v45 = vld [vmem:[%s948_s4] ss:$0 sm:$0xff]  ;;  %s769_s4 = scalar_lea.vmem %s511_s29, 128 }
  0x56   :  { %603 = vmatpush3.bf16.msra.mxu1 %v667_v20  ;;  %v549_v53 = vld [vmem:[%s950_s6] ss:$0 sm:$0xff]  ;;  %p770_p4 = scmp.ne.s32.totalorder %s511_s29, %s769_s4  ;;  %p775_p6 = scmp.lt.s32.totalorder %s769_s4, %s769_s4 }
  0x57   :  { %565 = vmatpush3.bf16.msra.mxu0 %v654_v8  ;;  %604 = vmatprep.subr.bf16.mxu1 %v805_v0 }
  0x58   :  { %566 = vmatprep.subr.bf16.mxu0 %v655_v9  ;;  %p776_p7 = por %p775_p6, %p774_p5 }
  0x5a   :  { %605 = vmatpush3.bf16.msra.mxu1 %v668_v22  ;;  %p777_p8 = pnand %p776_p7, %p770_p4 }
  0x5b   :  { %567 = vmatpush3.bf16.msra.mxu0 %v656_v10  ;;  %606 = vmatprep.subr.bf16.mxu1 %v805_v0 }
  0x5c   :  { %568 = vmatprep.subr.bf16.mxu0 %v657_v11 }
  0x5e   :  { %607 = vmatpush3.bf16.msra.mxu1 %v669_v24 }
  0x5f   :  { %569 = vmatpush3.bf16.msra.mxu0 %v658_v15  ;;  %608 = vmatprep.subr.bf16.mxu1 %v805_v0 }
  0x60   :  { %570 = vmatprep.subr.bf16.mxu0 %v659_v16 }
  0x62   :  { %609 = vmatpush3.bf16.msra.mxu1 %v670_v25 }
  0x63   :  { %571 = vmatpush3.bf16.msra.mxu0 %v660_v18  ;;  %610 = vmatprep.subr.bf16.mxu1 %v805_v0 }
  0x64   :  { %572 = vmatprep.subr.bf16.mxu0 %v661_v19 }
  0x66   :  { %611 = vmatpush3.bf16.msra.mxu1 %v671_v26 }
  0x67   :  { %573 = vmatpush3.bf16.msra.mxu0 %v662_v21  ;;  %612 = vmatprep.subr.bf16.mxu1 %v805_v0 }
  0x68   :  { %618 = vmatprep.subr.bf16.mxu0 %v805_v0 }
  0x6a   :  { %256 = vmatmul.mubr.bf16.vlgmr.msra.gmra.mrb[0].mxu0 %v521_v23  ;;  %613 = vmatpush3.bf16.msra.mxu1 %v672_v27 }
  0x6b   :  { %634 = vmatprep.mubr.msk.bf16.mxu0 %vm806_vm0, %v805_v0  ;;  %619 = vmatpush3.bf16.msra.mxu0 %v673_v28 }
  0x6c   :  { %620 = vmatprep.subr.bf16.mxu0 %v805_v0 }
  0x6f   :  { %621 = vmatpush3.bf16.msra.mxu0 %v674_v29 }
  0x70   :  { %622 = vmatprep.subr.bf16.mxu0 %v805_v0 }
  0x73   :  { %623 = vmatpush3.bf16.msra.mxu0 %v675_v30 }
  0x74   :  { %624 = vmatprep.subr.bf16.mxu0 %v805_v0 }
  0x77   :  { %625 = vmatpush3.bf16.msra.mxu0 %v676_v31 }
  0x78   :  { %626 = vmatprep.subr.bf16.mxu0 %v805_v0 }
  0x7b   :  { %627 = vmatpush3.bf16.msra.mxu0 %v677_v32 }
  0x7c   :  { %628 = vmatprep.subr.bf16.mxu0 %v805_v0 }
  0x7f   :  { %629 = vmatpush3.bf16.msra.mxu0 %v678_v33 }
  0x80   :  { %630 = vmatprep.subr.bf16.mxu0 %v805_v0 }
  0x83   :  { %631 = vmatpush3.bf16.msra.mxu0 %v679_v43 }
  0x84   :  { %632 = vmatprep.subr.bf16.mxu0 %v805_v0 }
  0x87   :  { %633 = vmatpush3.bf16.msra.mxu0 %v680_v44 }
 0x13d   :  { %v574_v34 = vpop.f32.mrb[0].mxu0 }
 0x13e   :  { %v575_v35 = vpop.f32.mrb[1].mxu0 }
 0x13f   :  { %v576_v37 = vadd.f32 %v575_v35, %v574_v34  ;;  %v577_v38 = vpop.f32.mrb[2].mxu0 }
 0x140   :  { %v578_v39 = vpop.f32.mrb[3].mxu0 }
 0x141   :  { %v276_v40 = vadd.f32 %v576_v37, %v539_v36 }
 0x143   :  { %v277_v41 = vmax.f32 %v276_v40, 0.0 }
 0x145   :  { %v278_v42 = vpack.c.bf16 %v277_v41, %v277_v41 }
 0x147   :  { %615 = vmatmul.mubr.bf16.vlgmr.msra.gmra.mrb[0].mxu1 %v278_v42 }
 0x21a   :  { %v384_v46 = vpop.f32.mrb[0].mxu1 }
 0x21b   :  { %v385_v47 = vadd.f32 %v540_v45, %v384_v46  ;;  %v616_v48 = vpop.f32.mrb[1].mxu1 }
 0x21c   :  { %v387_v49 = vpop.f32.mrb[2].mxu1 }
 0x21d   :  { %v390_v50 = vmax.f32 %v385_v47, 0.0  ;;  %v617_v51 = vpop.f32.mrb[3].mxu1 }
 0x21f   :  { %v391_v52 = vpack.c.bf16 %v390_v50, %v390_v50 }
 0x221   :  { %635 = vmatmul.mubr.bf16.vlgmr.msra.gmra.mrb[4].mxu0 %v391_v52 }
 0x2f4   :  { %v497_v54 = vpop.f32.mrb[4].mxu0 }
 0x2f5   :  { %v498_v55 = vadd.f32 %v549_v53, %v497_v54  ;;  %v636_v56 = vpop.f32.mrb[5].mxu0 }
 0x2f6   :  { %v500_v57 = vpop.f32.mrb[6].mxu0 }
 0x2f7   :  { %503 = vst [vmem:[#allocation11] sm:$0xff] %v498_v55  ;;  %v637_v58 = vpop.f32.mrb[7].mxu0 }
 0x2f8   :  { %780 = shalt.err (!%p777_p8)
}
 0x2f9   :  { %s781_s6 = scalar_lea.hbm %s951_s7, 128 }
 0x2fa   :  { %p782_p9 = scmp.ne.s32.totalorder %s951_s7, %s781_s6  ;;  %p785_p10 = scmp.lt.u32.totalorder %s781_s6, %s951_s7 }
 0x2fc   :  { %p787_p11 = pnand %p785_p10, %p782_p9 }
 0x2fe   :  { %790 = shalt.err (!%p787_p11)
}
 0x2ff   :  { %513 = dma.vmem_to_hbm [thread:$0]  %s511_s29, 128, %s951_s7, [#allocation5]  }
 0x300   :  { %797 = dma.done.wait [#allocation5], 128  }
 0x301   :  { %798 = vsyncadd [#allocation5], 4294967168 }
 0x302   :  { %517 = vsyncpa [#allocation4], 1 }
 0x303   :  { %518 = vsyncpa [#allocation7], 1 }
 0x304   :  { %519 = vsyncpa [#allocation10], 1 }
 0x305   :  { %520 = vsyncpa [#allocation5], 1 }

</bundles_post_ra>
